<compile_context>
chip_gen: v7x
topology: tpu7x:2x2x1
jax: 0.10.0
libtpu: 0.0.40
codegen_flags: <defaults>
</compile_context>

<pallas_src>
import functools

import jax
import jax.numpy as jnp
from jax import lax
from jax.experimental import pallas as pl
from jax.experimental.pallas import tpu as pltpu

_EPS = 1e-5
F_PAD = 128          # lane-padded width of every activation / weight block


def _round_up(n, m):
    return ((n + m - 1) // m) * m


def structured_net_kernel(
    x_cat_ref,    # (B_pad, n_cat)  int32 categorical indices (padded rows = 0)
    x_cont_ref,   # (B_pad, 128)    f32, continuous features in lanes [0, n_cont)
    we1_ref,      # (C_pad, 128)    bf16, merged (embedding o layer-1) weight
    wc1_ref,      # (128, 128)      bf16, continuous part of layer-1 (cont-BN affine folded)
    w2_ref,       # (128, 128)      bf16, layer-2 weight (BN1 affine folded)
    wo_ref,       # (128, 128)      bf16, output weight (BN2 affine folded)
    p_ref,        # (8, 128)        f32 rows: b1, b2, bo (BN betas folded), rest 0
    out_ref,      # (B_pad, 128)    f32
    *, n_cat, cat_offsets, n_valid,
):
    b_pad = x_cont_ref.shape[0]
    c_pad = we1_ref.shape[0]

    # Row-validity mask for the batch statistics (padded batch rows drop out).
    row_mask = None
    if n_valid != b_pad:
        rows = lax.broadcasted_iota(jnp.int32, (b_pad, 1), 0)
        row_mask = rows < n_valid
    inv_n = 1.0 / float(n_valid)

    def bn_norm(h):
        # One-pass batch stats: sum & sum-of-squares, biased var, eps=1e-5.
        # All-zero padded lanes give mu=0, var=0 -> (0-0)*rsqrt(eps)=0, so the
        # zero-padding invariant is preserved for the next matmul.
        hm = h if row_mask is None else jnp.where(row_mask, h, 0.0)
        s1 = jnp.sum(hm, axis=0, keepdims=True)
        s2 = jnp.sum(hm * hm, axis=0, keepdims=True)
        mu = s1 * inv_n
        var = jnp.maximum(s2 * inv_n - mu * mu, 0.0)
        return (h - mu) * lax.rsqrt(var + _EPS)

    # --- Embedding lookup fused with layer 1:
    #     one-hot(x_cat) @ (blockdiag(E) @ W1_emb^T)  ==  x_emb @ W1_emb^T
    lane = lax.broadcasted_iota(jnp.int32, (b_pad, c_pad), 1)
    onehot = jnp.zeros((b_pad, c_pad), jnp.float32)
    for i in range(n_cat):                                  # static, tiny
        idx = x_cat_ref[:, i:i + 1] + cat_offsets[i]        # (B_pad, 1)
        onehot = onehot + (lane == idx).astype(jnp.float32)
    h = jnp.dot(onehot.astype(jnp.bfloat16), we1_ref[...],
                preferred_element_type=jnp.float32)

    # --- BatchNorm over continuous features (affine folded into wc1 / b1).
    xcn = bn_norm(x_cont_ref[...])
    h = h + jnp.dot(xcn.astype(jnp.bfloat16), wc1_ref[...],
                    preferred_element_type=jnp.float32)
    h = jnp.maximum(h + p_ref[0:1, :], 0.0)
    h = bn_norm(h)            # BN1 (affine folded into w2 / b2); dropout = id

    # --- Layer 2.
    h = jnp.dot(h.astype(jnp.bfloat16), w2_ref[...],
                preferred_element_type=jnp.float32)
    h = jnp.maximum(h + p_ref[1:2, :], 0.0)
    h = bn_norm(h)            # BN2 (affine folded into wo / bo)

    # --- Output linear (lane-dense 128-wide store; wrapper slices [:B, :out_sz]).
    out_ref[...] = jnp.dot(h.astype(jnp.bfloat16), wo_ref[...],
                           preferred_element_type=jnp.float32) + p_ref[2:3, :]


@functools.partial(jax.jit, static_argnames=("out_sz", "cat_offsets"))
def structured_net_forward(x_cat, x_cont, params, *, out_sz, cat_offsets):
    b = x_cat.shape[0]
    n_cat = x_cat.shape[1]
    n_cont = x_cont.shape[1]
    assert n_cat == len(cat_offsets) and n_cont <= F_PAD

    b_pad = max(16, _round_up(b, 16))     # multiple of 16 for bf16 sublane packing

    # Only two tiny pad ops feed the kernel (no gather / concat glue).
    x_cat_p = jnp.pad(x_cat.astype(jnp.int32), ((0, b_pad - b), (0, 0)))
    x_cont_p = jnp.pad(x_cont.astype(jnp.float32),
                       ((0, b_pad - b), (0, F_PAD - n_cont)))

    kernel = functools.partial(structured_net_kernel, n_cat=n_cat,
                               cat_offsets=cat_offsets, n_valid=b)
    vmem = pl.BlockSpec(memory_space=pltpu.MemorySpace.VMEM)

    out = pl.pallas_call(
        kernel,
        out_shape=jax.ShapeDtypeStruct((b_pad, F_PAD), jnp.float32),
        in_specs=[vmem] * 7,
        out_specs=vmem,
        compiler_params=pltpu.CompilerParams(
            # Raise the scoped-VMEM ceiling (v5e default 16 MiB) so larger
            # batches keep working; trivially satisfied at demo sizes.
            vmem_limit_bytes=64 * 1024 * 1024),
    )(x_cat_p, x_cont_p, params["we1"], params["wc1"], params["w2"],
      params["wo"], params["pvec"])

    return out[:b, :out_sz]


def init_params(key, emb_szs, n_cont, szs, out_sz):
    """Deterministic init matching the PyTorch module, pre-folded / pre-padded
    for the kernel.  Also returns the raw (unfolded) parameters for a plain-JAX
    reference check, plus the static per-table category offsets."""
    assert len(szs) == 2, "kernel is specialized to two hidden layers"
    assert len(emb_szs) > 0
    n_tables = len(emb_szs)
    keys = jax.random.split(key, n_tables + 3)

    # Embeddings: uniform(-sc, sc), sc = 2 / (dim + 1)
    emb_weights = []
    for j, (c, s) in enumerate(emb_szs):
        sc = 2.0 / (s + 1)
        emb_weights.append(jax.random.uniform(keys[j], (c, s), jnp.float32,
                                              minval=-sc, maxval=sc))
    n_emb = sum(s for _, s in emb_szs)
    dims = [n_emb + n_cont] + list(szs)
    assert dims[0] <= F_PAD and all(s <= F_PAD for s in szs) and out_sz <= F_PAD

    def kaiming_linear(k, fan_in, fan_out):
        kw, kb = jax.random.split(k)
        std = (2.0 / fan_in) ** 0.5                 # kaiming_normal_, fan_in, gain sqrt(2)
        w = jax.random.normal(kw, (fan_out, fan_in), jnp.float32) * std
        bound = 1.0 / (fan_in ** 0.5)               # PyTorch default bias init
        bv = jax.random.uniform(kb, (1, fan_out), jnp.float32,
                                minval=-bound, maxval=bound)
        return w, bv

    w1, b1 = kaiming_linear(keys[n_tables + 0], dims[0], dims[1])
    w2, b2 = kaiming_linear(keys[n_tables + 1], dims[1], dims[2])
    wo, bo = kaiming_linear(keys[n_tables + 2], dims[2], out_sz)

    # BatchNorm affine params (PyTorch init: gamma=1, beta=0) -- folded below.
    gamma_c = jnp.ones((n_cont,), jnp.float32)
    beta_c = jnp.zeros((n_cont,), jnp.float32)
    g1, be1 = jnp.ones((dims[1],), jnp.float32), jnp.zeros((dims[1],), jnp.float32)
    g2, be2 = jnp.ones((dims[2],), jnp.float32), jnp.zeros((dims[2],), jnp.float32)

    w1_emb = w1[:, :n_emb]                 # (szs0, n_emb)
    w1_cont = w1[:, n_emb:]                # (szs0, n_cont)

    # Merged (embedding gather o layer-1) weight: rows indexed by the global
    # category index; onehot @ we1 == concat(emb rows) @ W1_emb^T.
    blocks, doff = [], 0
    for (c, s), emb in zip(emb_szs, emb_weights):
        blocks.append(emb @ w1_emb[:, doff:doff + s].T)      # (card, szs0)
        doff += s
    we1 = jnp.concatenate(blocks, axis=0)                    # (sum_cards, szs0)
    sum_cards = we1.shape[0]
    c_pad = _round_up(sum_cards, F_PAD)
    we1 = jnp.pad(we1, ((0, c_pad - sum_cards),
                        (0, F_PAD - dims[1]))).astype(jnp.bfloat16)

    # Continuous part of layer 1, with the continuous-BN affine folded in.
    wc1 = gamma_c[:, None] * w1_cont.T                       # (n_cont, szs0)
    wc1 = jnp.pad(wc1, ((0, F_PAD - n_cont),
                        (0, F_PAD - dims[1]))).astype(jnp.bfloat16)
    b1f = b1 + beta_c[None, :] @ w1_cont.T                   # (1, szs0)

    # BN1 affine folded into layer 2; BN2 affine folded into the output linear.
    w2f = jnp.pad(g1[:, None] * w2.T, ((0, F_PAD - dims[1]),
                                       (0, F_PAD - dims[2]))).astype(jnp.bfloat16)
    b2f = b2 + be1[None, :] @ w2.T
    wof = jnp.pad(g2[:, None] * wo.T, ((0, F_PAD - dims[2]),
                                       (0, F_PAD - out_sz))).astype(jnp.bfloat16)
    bof = bo + be2[None, :] @ wo.T

    def pad_row(a):
        return jnp.pad(a, ((0, 0), (0, F_PAD - a.shape[1])))

    pvec = jnp.concatenate(
        [pad_row(b1f), pad_row(b2f), pad_row(bof)]
        + [jnp.zeros((1, F_PAD), jnp.float32)] * 5, axis=0).astype(jnp.float32)

    cat_offsets, off = [], 0
    for c, _ in emb_szs:
        cat_offsets.append(off)
        off += c

    params = {"we1": we1, "wc1": wc1, "w2": w2f, "wo": wof, "pvec": pvec}
    ref = {"emb_weights": emb_weights, "w1": w1, "b1": b1,
           "w2": w2, "b2": b2, "wo": wo, "bo": bo}
    return params, ref, tuple(cat_offsets)


def _bf(a):
    return a.astype(jnp.bfloat16).astype(jnp.float32)


def reference_forward(x_cat, x_cont, ref):
    """Plain-JAX spec-style forward (training-mode BN, eval-mode dropout);
    matmul operands rounded to bf16 to mirror the kernel's MXU precision."""
    embs = [w[x_cat[:, i]] for i, w in enumerate(ref["emb_weights"])]
    xc = x_cont.astype(jnp.float32)
    mu = jnp.mean(xc, axis=0, keepdims=True)
    var = jnp.mean((xc - mu) ** 2, axis=0, keepdims=True)
    xc = (xc - mu) * lax.rsqrt(var + _EPS)
    x = jnp.concatenate(embs + [xc], axis=1)

    def lin(h, w, b):
        return jnp.dot(_bf(h), _bf(w.T), preferred_element_type=jnp.float32) + b

    def bn(h):
        mu = jnp.mean(h, axis=0, keepdims=True)
        var = jnp.mean((h - mu) ** 2, axis=0, keepdims=True)
        return (h - mu) * lax.rsqrt(var + _EPS)

    h = bn(jnp.maximum(lin(x, ref["w1"], ref["b1"]), 0.0))
    h = bn(jnp.maximum(lin(h, ref["w2"], ref["b2"]), 0.0))
    return lin(h, ref["wo"], ref["bo"])


if __name__ == "__main__":
    key = jax.random.PRNGKey(0)

    emb_szs = [(10, 4), (7, 3)]     # (cardinality, emb_dim)
    n_cont = 5
    szs = [32, 16]
    out_sz = 2
    B = 12                          # not a multiple of 16 -> exercises row masking

    k_params, k_cat0, k_cat1, k_cont = jax.random.split(key, 4)
    params, ref, cat_offsets = init_params(k_params, emb_szs, n_cont, szs, out_sz)

    x_cat = jnp.stack(
        [
            jax.random.randint(k_cat0, (B,), 0, emb_szs[0][0], dtype=jnp.int32),
            jax.random.randint(k_cat1, (B,), 0, emb_szs[1][0], dtype=jnp.int32),
        ],
        axis=1,
    )                                                       # (B, 2) int32
    x_cont = jax.random.normal(k_cont, (B, n_cont), jnp.float32)

    out = structured_net_forward(x_cat, x_cont, params,
                                 out_sz=out_sz, cat_offsets=cat_offsets)
    out = jax.block_until_ready(out)

    assert out.shape == (B, out_sz) and out.dtype == jnp.float32
    assert bool(jnp.all(jnp.isfinite(out)))

    ref_out = reference_forward(x_cat, x_cont, ref)
    assert bool(jnp.allclose(out, ref_out, atol=1e-1, rtol=1e-1)), (
        "max abs diff %e" % float(jnp.max(jnp.abs(out - ref_out))))

    print("KERNEL_OK")
</pallas_src>

<mosaic_0001>
module attributes {stable_mosaic.version = 11 : i64} {
  func.func @structured_net_kernel(%arg0: memref<16x2xi32, #tpu.memory_space<vmem>>, %arg1: memref<16x128xf32, #tpu.memory_space<vmem>>, %arg2: memref<128x128xbf16, #tpu.memory_space<vmem>>, %arg3: memref<128x128xbf16, #tpu.memory_space<vmem>>, %arg4: memref<128x128xbf16, #tpu.memory_space<vmem>>, %arg5: memref<128x128xbf16, #tpu.memory_space<vmem>>, %arg6: memref<8x128xf32, #tpu.memory_space<vmem>>, %arg7: memref<16x128xf32, #tpu.memory_space<vmem>>) attributes {dimension_semantics = [], scalar_prefetch = 0 : i64, scratch_operands = 0 : i64, tpu.core_type = #tpu.core_type<tc>} {
    %0 = tpu.iota {dimensions = array<i32: 0>} : vector<16x1xi32>
    %c12_i32 = arith.constant 12 : i32
    %1 = vector.broadcast %c12_i32 : i32 to vector<16x1xi32>
    %2 = arith.cmpi slt, %0, %1 : vector<16x1xi32>
    %3 = tpu.iota {dimensions = array<i32: 1>} : vector<16x128xi32>
    %cst = arith.constant 0.000000e+00 : f32
    %4 = vector.broadcast %cst : f32 to vector<16x128xf32>
    %c0 = arith.constant 0 : index
    %c0_0 = arith.constant 0 : index
    %5 = vector.load %arg0[%c0, %c0_0] : memref<16x2xi32, #tpu.memory_space<vmem>>, vector<16x1xi32>
    %c0_i32 = arith.constant 0 : i32
    %6 = vector.broadcast %c0_i32 : i32 to vector<16x1xi32>
    %7 = arith.addi %5, %6 : vector<16x1xi32>
    %8 = vector.broadcast %7 : vector<16x1xi32> to vector<16x128xi32>
    %9 = arith.cmpi eq, %3, %8 : vector<16x128xi32>
    %10 = arith.extui %9 : vector<16x128xi1> to vector<16x128xi32>
    %11 = arith.sitofp %10 : vector<16x128xi32> to vector<16x128xf32>
    %12 = arith.addf %4, %11 : vector<16x128xf32>
    %c0_1 = arith.constant 0 : index
    %c1 = arith.constant 1 : index
    %13 = vector.load %arg0[%c0_1, %c1] : memref<16x2xi32, #tpu.memory_space<vmem>>, vector<16x1xi32>
    %c10_i32 = arith.constant 10 : i32
    %14 = vector.broadcast %c10_i32 : i32 to vector<16x1xi32>
    %15 = arith.addi %13, %14 : vector<16x1xi32>
    %16 = vector.broadcast %15 : vector<16x1xi32> to vector<16x128xi32>
    %17 = arith.cmpi eq, %3, %16 : vector<16x128xi32>
    %18 = arith.extui %17 : vector<16x128xi1> to vector<16x128xi32>
    %19 = arith.sitofp %18 : vector<16x128xi32> to vector<16x128xf32>
    %20 = arith.addf %12, %19 : vector<16x128xf32>
    %21 = arith.truncf %20 : vector<16x128xf32> to vector<16x128xbf16>
    %c0_2 = arith.constant 0 : index
    %c0_3 = arith.constant 0 : index
    %22 = vector.load %arg2[%c0_2, %c0_3] : memref<128x128xbf16, #tpu.memory_space<vmem>>, vector<128x128xbf16>
    %cst_4 = arith.constant dense<0.000000e+00> : vector<16x128xf32>
    %23 = tpu.matmul %21, %22, %cst_4 {dimension_numbers = #tpu.dot_dimension_numbers<[1], [0], [0], [1], [0, 0, 1, 1], [], []>} : vector<16x128xbf16>, vector<128x128xbf16>, vector<16x128xf32> -> vector<16x128xf32>
    %c0_5 = arith.constant 0 : index
    %c0_6 = arith.constant 0 : index
    %24 = vector.load %arg1[%c0_5, %c0_6] : memref<16x128xf32, #tpu.memory_space<vmem>>, vector<16x128xf32>
    %cst_7 = arith.constant 0.000000e+00 : f32
    %25 = vector.shape_cast %2 : vector<16x1xi1> to vector<16x1xi1>
    %26 = vector.broadcast %25 : vector<16x1xi1> to vector<16x128xi1>
    %27 = vector.broadcast %cst_7 : f32 to vector<16x128xf32>
    %28 = arith.select %26, %24, %27 : vector<16x128xi1>, vector<16x128xf32>
    %cst_8 = arith.constant dense<0.000000e+00> : vector<128xf32>
    %29 = vector.multi_reduction <add>, %28, %cst_8 [0] : vector<16x128xf32> to vector<128xf32>
    %30 = vector.shape_cast %29 : vector<128xf32> to vector<1x128xf32>
    %31 = arith.mulf %28, %28 : vector<16x128xf32>
    %cst_9 = arith.constant dense<0.000000e+00> : vector<128xf32>
    %32 = vector.multi_reduction <add>, %31, %cst_9 [0] : vector<16x128xf32> to vector<128xf32>
    %33 = vector.shape_cast %32 : vector<128xf32> to vector<1x128xf32>
    %cst_10 = arith.constant 0.0833333358 : f32
    %34 = vector.broadcast %cst_10 : f32 to vector<1x128xf32>
    %35 = arith.mulf %30, %34 : vector<1x128xf32>
    %cst_11 = arith.constant 0.0833333358 : f32
    %36 = vector.broadcast %cst_11 : f32 to vector<1x128xf32>
    %37 = arith.mulf %33, %36 : vector<1x128xf32>
    %38 = arith.mulf %35, %35 : vector<1x128xf32>
    %39 = arith.subf %37, %38 : vector<1x128xf32>
    %cst_12 = arith.constant 0.000000e+00 : f32
    %40 = vector.broadcast %cst_12 : f32 to vector<1x128xf32>
    %41 = arith.maximumf %39, %40 : vector<1x128xf32>
    %42 = vector.broadcast %35 : vector<1x128xf32> to vector<16x128xf32>
    %43 = arith.subf %24, %42 : vector<16x128xf32>
    %cst_13 = arith.constant 9.99999974E-6 : f32
    %44 = vector.broadcast %cst_13 : f32 to vector<1x128xf32>
    %45 = arith.addf %41, %44 : vector<1x128xf32>
    %46 = math.rsqrt %45 : vector<1x128xf32>
    %47 = vector.broadcast %46 : vector<1x128xf32> to vector<16x128xf32>
    %48 = arith.mulf %43, %47 : vector<16x128xf32>
    %49 = arith.truncf %48 : vector<16x128xf32> to vector<16x128xbf16>
    %c0_14 = arith.constant 0 : index
    %c0_15 = arith.constant 0 : index
    %50 = vector.load %arg3[%c0_14, %c0_15] : memref<128x128xbf16, #tpu.memory_space<vmem>>, vector<128x128xbf16>
    %cst_16 = arith.constant dense<0.000000e+00> : vector<16x128xf32>
    %51 = tpu.matmul %49, %50, %cst_16 {dimension_numbers = #tpu.dot_dimension_numbers<[1], [0], [0], [1], [0, 0, 1, 1], [], []>} : vector<16x128xbf16>, vector<128x128xbf16>, vector<16x128xf32> -> vector<16x128xf32>
    %52 = arith.addf %23, %51 : vector<16x128xf32>
    %c0_17 = arith.constant 0 : index
    %c0_18 = arith.constant 0 : index
    %53 = vector.load %arg6[%c0_17, %c0_18] : memref<8x128xf32, #tpu.memory_space<vmem>>, vector<1x128xf32>
    %54 = vector.broadcast %53 : vector<1x128xf32> to vector<16x128xf32>
    %55 = arith.addf %52, %54 : vector<16x128xf32>
    %cst_19 = arith.constant 0.000000e+00 : f32
    %56 = vector.broadcast %cst_19 : f32 to vector<16x128xf32>
    %57 = arith.maximumf %55, %56 : vector<16x128xf32>
    %cst_20 = arith.constant 0.000000e+00 : f32
    %58 = vector.shape_cast %2 : vector<16x1xi1> to vector<16x1xi1>
    %59 = vector.broadcast %58 : vector<16x1xi1> to vector<16x128xi1>
    %60 = vector.broadcast %cst_20 : f32 to vector<16x128xf32>
    %61 = arith.select %59, %57, %60 : vector<16x128xi1>, vector<16x128xf32>
    %cst_21 = arith.constant dense<0.000000e+00> : vector<128xf32>
    %62 = vector.multi_reduction <add>, %61, %cst_21 [0] : vector<16x128xf32> to vector<128xf32>
    %63 = vector.shape_cast %62 : vector<128xf32> to vector<1x128xf32>
    %64 = arith.mulf %61, %61 : vector<16x128xf32>
    %cst_22 = arith.constant dense<0.000000e+00> : vector<128xf32>
    %65 = vector.multi_reduction <add>, %64, %cst_22 [0] : vector<16x128xf32> to vector<128xf32>
    %66 = vector.shape_cast %65 : vector<128xf32> to vector<1x128xf32>
    %cst_23 = arith.constant 0.0833333358 : f32
    %67 = vector.broadcast %cst_23 : f32 to vector<1x128xf32>
    %68 = arith.mulf %63, %67 : vector<1x128xf32>
    %cst_24 = arith.constant 0.0833333358 : f32
    %69 = vector.broadcast %cst_24 : f32 to vector<1x128xf32>
    %70 = arith.mulf %66, %69 : vector<1x128xf32>
    %71 = arith.mulf %68, %68 : vector<1x128xf32>
    %72 = arith.subf %70, %71 : vector<1x128xf32>
    %cst_25 = arith.constant 0.000000e+00 : f32
    %73 = vector.broadcast %cst_25 : f32 to vector<1x128xf32>
    %74 = arith.maximumf %72, %73 : vector<1x128xf32>
    %75 = vector.broadcast %68 : vector<1x128xf32> to vector<16x128xf32>
    %76 = arith.subf %57, %75 : vector<16x128xf32>
    %cst_26 = arith.constant 9.99999974E-6 : f32
    %77 = vector.broadcast %cst_26 : f32 to vector<1x128xf32>
    %78 = arith.addf %74, %77 : vector<1x128xf32>
    %79 = math.rsqrt %78 : vector<1x128xf32>
    %80 = vector.broadcast %79 : vector<1x128xf32> to vector<16x128xf32>
    %81 = arith.mulf %76, %80 : vector<16x128xf32>
    %82 = arith.truncf %81 : vector<16x128xf32> to vector<16x128xbf16>
    %c0_27 = arith.constant 0 : index
    %c0_28 = arith.constant 0 : index
    %83 = vector.load %arg4[%c0_27, %c0_28] : memref<128x128xbf16, #tpu.memory_space<vmem>>, vector<128x128xbf16>
    %cst_29 = arith.constant dense<0.000000e+00> : vector<16x128xf32>
    %84 = tpu.matmul %82, %83, %cst_29 {dimension_numbers = #tpu.dot_dimension_numbers<[1], [0], [0], [1], [0, 0, 1, 1], [], []>} : vector<16x128xbf16>, vector<128x128xbf16>, vector<16x128xf32> -> vector<16x128xf32>
    %c1_30 = arith.constant 1 : index
    %c0_31 = arith.constant 0 : index
    %85 = vector.load %arg6[%c1_30, %c0_31] : memref<8x128xf32, #tpu.memory_space<vmem>>, vector<1x128xf32>
    %86 = vector.broadcast %85 : vector<1x128xf32> to vector<16x128xf32>
    %87 = arith.addf %84, %86 : vector<16x128xf32>
    %cst_32 = arith.constant 0.000000e+00 : f32
    %88 = vector.broadcast %cst_32 : f32 to vector<16x128xf32>
    %89 = arith.maximumf %87, %88 : vector<16x128xf32>
    %cst_33 = arith.constant 0.000000e+00 : f32
    %90 = vector.shape_cast %2 : vector<16x1xi1> to vector<16x1xi1>
    %91 = vector.broadcast %90 : vector<16x1xi1> to vector<16x128xi1>
    %92 = vector.broadcast %cst_33 : f32 to vector<16x128xf32>
    %93 = arith.select %91, %89, %92 : vector<16x128xi1>, vector<16x128xf32>
    %cst_34 = arith.constant dense<0.000000e+00> : vector<128xf32>
    %94 = vector.multi_reduction <add>, %93, %cst_34 [0] : vector<16x128xf32> to vector<128xf32>
    %95 = vector.shape_cast %94 : vector<128xf32> to vector<1x128xf32>
    %96 = arith.mulf %93, %93 : vector<16x128xf32>
    %cst_35 = arith.constant dense<0.000000e+00> : vector<128xf32>
    %97 = vector.multi_reduction <add>, %96, %cst_35 [0] : vector<16x128xf32> to vector<128xf32>
    %98 = vector.shape_cast %97 : vector<128xf32> to vector<1x128xf32>
    %cst_36 = arith.constant 0.0833333358 : f32
    %99 = vector.broadcast %cst_36 : f32 to vector<1x128xf32>
    %100 = arith.mulf %95, %99 : vector<1x128xf32>
    %cst_37 = arith.constant 0.0833333358 : f32
    %101 = vector.broadcast %cst_37 : f32 to vector<1x128xf32>
    %102 = arith.mulf %98, %101 : vector<1x128xf32>
    %103 = arith.mulf %100, %100 : vector<1x128xf32>
    %104 = arith.subf %102, %103 : vector<1x128xf32>
    %cst_38 = arith.constant 0.000000e+00 : f32
    %105 = vector.broadcast %cst_38 : f32 to vector<1x128xf32>
    %106 = arith.maximumf %104, %105 : vector<1x128xf32>
    %107 = vector.broadcast %100 : vector<1x128xf32> to vector<16x128xf32>
    %108 = arith.subf %89, %107 : vector<16x128xf32>
    %cst_39 = arith.constant 9.99999974E-6 : f32
    %109 = vector.broadcast %cst_39 : f32 to vector<1x128xf32>
    %110 = arith.addf %106, %109 : vector<1x128xf32>
    %111 = math.rsqrt %110 : vector<1x128xf32>
    %112 = vector.broadcast %111 : vector<1x128xf32> to vector<16x128xf32>
    %113 = arith.mulf %108, %112 : vector<16x128xf32>
    %114 = arith.truncf %113 : vector<16x128xf32> to vector<16x128xbf16>
    %c0_40 = arith.constant 0 : index
    %c0_41 = arith.constant 0 : index
    %115 = vector.load %arg5[%c0_40, %c0_41] : memref<128x128xbf16, #tpu.memory_space<vmem>>, vector<128x128xbf16>
    %cst_42 = arith.constant dense<0.000000e+00> : vector<16x128xf32>
    %116 = tpu.matmul %114, %115, %cst_42 {dimension_numbers = #tpu.dot_dimension_numbers<[1], [0], [0], [1], [0, 0, 1, 1], [], []>} : vector<16x128xbf16>, vector<128x128xbf16>, vector<16x128xf32> -> vector<16x128xf32>
    %c2 = arith.constant 2 : index
    %c0_43 = arith.constant 0 : index
    %117 = vector.load %arg6[%c2, %c0_43] : memref<8x128xf32, #tpu.memory_space<vmem>>, vector<1x128xf32>
    %118 = vector.broadcast %117 : vector<1x128xf32> to vector<16x128xf32>
    %119 = arith.addf %116, %118 : vector<16x128xf32>
    %c0_44 = arith.constant 0 : index
    %c0_45 = arith.constant 0 : index
    %120 = vector.load %arg7[%c0_44, %c0_45] : memref<16x128xf32, #tpu.memory_space<vmem>>, vector<16x128xf32>
    tpu.vector_store %arg7[%c0_44, %c0_45], %119 {strides = array<i32>} : memref<16x128xf32, #tpu.memory_space<vmem>>, vector<16x128xf32>,
    return
  }
}

</mosaic_0001>

<bundles_post_ra>
// kernel: structured_net_forward.1
= control target key start
LH: loop header
LB: loop body
LE: loop exit
PB: predicated region body
PF: predicated region fallthrough
CT: control target
= control target key end

     0   :  { %12 = vsyncpa [#allocation3], 0  ;;  %s1346_s0 = inlined_call_operand.hbm [shape: s32[16,2], index: 0, kind: input, shape index: {}]   ;;  %s1347_s1 = inlined_call_operand.hbm [shape: f32[16,128], index: 1, kind: input, shape index: {}]   ;;  %s1348_s2 = inlined_call_operand.hbm [shape: bf16[128,128], index: 2, kind: input, shape index: {}]   ;;  %s1349_s3 = inlined_call_operand.hbm [shape: bf16[128,128], index: 3, kind: input, shape index: {}]   ;;  %s1350_s4 = inlined_call_operand.hbm [shape: bf16[128,128], index: 4, kind: input, shape index: {}]   ;;  %s1351_s5 = inlined_call_operand.hbm [shape: bf16[128,128], index: 5, kind: input, shape index: {}]   ;;  %s1352_s6 = inlined_call_operand.hbm [shape: f32[8,128], index: 6, kind: input, shape index: {}]   ;;  %s1353_s7 = inlined_call_operand.hbm [shape: f32[16,128], index: 7, kind: output, shape index: {}]  }
   0x1   :  { %13 = vsyncpa [#allocation6], 0 }
   0x2   :  { %14 = vsyncpa [#allocation9], 0 }
   0x3   :  { %15 = vsyncpa [#allocation12], 0 }
   0x4   :  { %16 = vsyncpa [#allocation4], 0  ;;  %s1118_s24 = smov [#allocation5]   ;;  %s932_s28 = scalar_lea.hbm %s1347_s1, 256 }
   0x5   :  { %s34_s25 = sshll.u32 %s1118_s24, 4  ;;  %p933_p0 = scmp.ne.s32.totalorder %s1347_s1, %s932_s28  ;;  %s35_s25 = int_to_ptr.vmem [resolvable:$true] %s34_s25 }
   0x6   :  { %p936_p1 = scmp.lt.u32.totalorder %s932_s28, %s1347_s1 }
   0x8   :  { %p938_p2 = pnand %p936_p1, %p933_p0 }
   0xa   :  { %941 = shalt.err (!%p938_p2)
}
   0xb   :  { %s942_s10 = scalar_lea.vmem %s35_s25, 256  ;;  %p947_p4 = scmp.lt.s32.totalorder %s35_s25, %s35_s25 }
   0xc   :  { %p943_p3 = scmp.ne.s32.totalorder %s35_s25, %s942_s10  ;;  %p948_p5 = scmp.lt.s32.totalorder %s942_s10, %s942_s10 }
   0xe   :  { %p949_p6 = por %p948_p5, %p947_p4 }
  0x10   :  { %p950_p7 = pnand %p949_p6, %p943_p3 }
  0x12   :  { %953 = shalt.err (!%p950_p7)
}
  0x13   :  { %s1119_s11 = smov 128   ;;  %s1120_s12 = smov 8  }
  0x14   :  { %40 = dma.hbm_to_vmem [thread:$0]  %s1347_s1, 256, %s35_s25, [#allocation6], %s1119_s11, %s1119_s11, %s1120_s12  }
  0x15   :  { %s1121_s15 = smov [#allocation8]   ;;  %s1122_s17 = smov [#allocation11]  }
  0x16   :  { %s58_s16 = sshll.u32 %s1121_s15, 4  ;;  %s82_s18 = sshll.u32 %s1122_s17, 4  ;;  %s59_s16 = int_to_ptr.vmem [resolvable:$true] %s58_s16  ;;  %s83_s18 = int_to_ptr.vmem [resolvable:$true] %s82_s18 }
  0x17   :  { %s954_s21 = scalar_lea.hbm %s1349_s3, 1024 }
  0x18   :  { %p955_p8 = scmp.ne.s32.totalorder %s1349_s3, %s954_s21  ;;  %p958_p9 = scmp.lt.u32.totalorder %s954_s21, %s1349_s3 }
  0x1a   :  { %p960_p10 = pnand %p958_p9, %p955_p8 }
  0x1c   :  { %963 = shalt.err (!%p960_p10)
}
  0x1d   :  { %s964_s1 = scalar_lea.vmem %s59_s16, 1024  ;;  %p969_p12 = scmp.lt.s32.totalorder %s59_s16, %s59_s16 }
  0x1e   :  { %p965_p11 = scmp.ne.s32.totalorder %s59_s16, %s964_s1  ;;  %p970_p13 = scmp.lt.s32.totalorder %s964_s1, %s964_s1 }
  0x20   :  { %p971_p0 = por %p970_p13, %p969_p12 }
  0x22   :  { %p972_p1 = pnand %p971_p0, %p965_p11 }
  0x24   :  { %975 = shalt.err (!%p972_p1)
}
  0x25   :  { %s1123_s25 = smov 64   ;;  %s1124_s27 = smov 4  }
  0x26   :  { %64 = dma.hbm_to_vmem [thread:$0]  %s1349_s3, 1024, %s59_s16, [#allocation9], %s1123_s25, %s1123_s25, %s1124_s27  }
  0x27   :  { %s976_s9 = scalar_lea.hbm %s1351_s5, 1024 }
  0x28   :  { %p977_p2 = scmp.ne.s32.totalorder %s1351_s5, %s976_s9  ;;  %p980_p3 = scmp.lt.u32.totalorder %s976_s9, %s1351_s5 }
  0x2a   :  { %p982_p4 = pnand %p980_p3, %p977_p2 }
  0x2c   :  { %985 = shalt.err (!%p982_p4)
}
  0x2d   :  { %s986_s17 = scalar_lea.vmem %s83_s18, 1024  ;;  %p991_p6 = scmp.lt.s32.totalorder %s83_s18, %s83_s18 }
  0x2e   :  { %p987_p5 = scmp.ne.s32.totalorder %s83_s18, %s986_s17  ;;  %p992_p7 = scmp.lt.s32.totalorder %s986_s17, %s986_s17 }
  0x30   :  { %p993_p8 = por %p992_p7, %p991_p6 }
  0x32   :  { %p994_p9 = pnand %p993_p8, %p987_p5 }
  0x34   :  { %997 = shalt.err (!%p994_p9)
}
  0x35   :  { %88 = dma.hbm_to_vmem [thread:$0]  %s1351_s5, 1024, %s83_s18, [#allocation12], %s1123_s25, %s1123_s25, %s1124_s27  }
  0x36   :  { %s1125_s19 = smov [#allocation2]   ;;  %s1126_s21 = smov [#allocation7]  }
  0x37   :  { %s22_s20 = sshll.u32 %s1125_s19, 4  ;;  %s46_s22 = sshll.u32 %s1126_s21, 4  ;;  %s23_s20 = int_to_ptr.vmem [resolvable:$true] %s22_s20  ;;  %s47_s22 = int_to_ptr.vmem [resolvable:$true] %s46_s22 }
  0x38   :  { %s998_s26 = scalar_lea.hbm %s1346_s0, 256 }
  0x39   :  { %p999_p10 = scmp.ne.s32.totalorder %s1346_s0, %s998_s26  ;;  %p1002_p11 = scmp.lt.u32.totalorder %s998_s26, %s1346_s0 }
  0x3b   :  { %p1004_p12 = pnand %p1002_p11, %p999_p10 }
  0x3d   :  { %1007 = shalt.err (!%p1004_p12)
}
  0x3e   :  { %s1008_s5 = scalar_lea.vmem %s23_s20, 256  ;;  %p1013_p0 = scmp.lt.s32.totalorder %s23_s20, %s23_s20 }
  0x3f   :  { %p1009_p13 = scmp.ne.s32.totalorder %s23_s20, %s1008_s5  ;;  %p1014_p1 = scmp.lt.s32.totalorder %s1008_s5, %s1008_s5 }
  0x41   :  { %p1015_p2 = por %p1014_p1, %p1013_p0 }
  0x43   :  { %p1016_p3 = pnand %p1015_p2, %p1009_p13 }
  0x45   :  { %1019 = shalt.err (!%p1016_p3)
}
  0x46   :  { %28 = dma.hbm_to_vmem [thread:$0]  %s1346_s0, 256, %s23_s20, [#allocation3], %s1119_s11, %s1119_s11, %s1120_s12  }
  0x47   :  { %s1020_s13 = scalar_lea.hbm %s1348_s2, 1024 }
  0x48   :  { %p1021_p4 = scmp.ne.s32.totalorder %s1348_s2, %s1020_s13  ;;  %p1024_p5 = scmp.lt.u32.totalorder %s1020_s13, %s1348_s2 }
  0x4a   :  { %p1026_p6 = pnand %p1024_p5, %p1021_p4 }
  0x4c   :  { %1029 = shalt.err (!%p1026_p6)
}
  0x4d   :  { %s1030_s16 = scalar_lea.vmem %s47_s22, 1024  ;;  %p1035_p8 = scmp.lt.s32.totalorder %s47_s22, %s47_s22 }
  0x4e   :  { %p1031_p7 = scmp.ne.s32.totalorder %s47_s22, %s1030_s16  ;;  %p1036_p9 = scmp.lt.s32.totalorder %s1030_s16, %s1030_s16 }
  0x50   :  { %p1037_p10 = por %p1036_p9, %p1035_p8 }
  0x52   :  { %p1038_p11 = pnand %p1037_p10, %p1031_p7 }
  0x54   :  { %1041 = shalt.err (!%p1038_p11)
}
  0x55   :  { %52 = dma.hbm_to_vmem [thread:$0]  %s1348_s2, 1024, %s47_s22, [#allocation6], %s1123_s25, %s1123_s25, %s1124_s27  }
  0x56   :  { %s1127_s20 = smov [#allocation10]   ;;  %s1128_s23 = smov [#allocation13]  }
  0x57   :  { %s70_s21 = sshll.u32 %s1127_s20, 4  ;;  %s95_s24 = sshll.u32 %s1128_s23, 4  ;;  %s71_s21 = int_to_ptr.vmem [resolvable:$true] %s70_s21  ;;  %s96_s24 = int_to_ptr.vmem [resolvable:$true] %s95_s24 }
  0x58   :  { %s1042_s28 = scalar_lea.hbm %s1350_s4, 1024 }
  0x59   :  { %p1043_p12 = scmp.ne.s32.totalorder %s1350_s4, %s1042_s28  ;;  %p1046_p13 = scmp.lt.u32.totalorder %s1042_s28, %s1350_s4 }
  0x5b   :  { %p1048_p0 = pnand %p1046_p13, %p1043_p12 }
  0x5d   :  { %1051 = shalt.err (!%p1048_p0)
}
  0x5e   :  { %s1052_s2 = scalar_lea.vmem %s71_s21, 1024  ;;  %p1057_p2 = scmp.lt.s32.totalorder %s71_s21, %s71_s21 }
  0x5f   :  { %p1053_p1 = scmp.ne.s32.totalorder %s71_s21, %s1052_s2  ;;  %p1058_p3 = scmp.lt.s32.totalorder %s1052_s2, %s1052_s2 }
  0x61   :  { %p1059_p4 = por %p1058_p3, %p1057_p2 }
  0x63   :  { %p1060_p5 = pnand %p1059_p4, %p1053_p1 }
  0x65   :  { %1063 = shalt.err (!%p1060_p5)
}
  0x66   :  { %76 = dma.hbm_to_vmem [thread:$0]  %s1350_s4, 1024, %s71_s21, [#allocation9], %s1123_s25, %s1123_s25, %s1124_s27  }
  0x67   :  { %s1064_s13 = scalar_lea.hbm %s1352_s6, 128 }
  0x68   :  { %p1065_p6 = scmp.ne.s32.totalorder %s1352_s6, %s1064_s13  ;;  %p1068_p7 = scmp.lt.u32.totalorder %s1064_s13, %s1352_s6 }
  0x6a   :  { %p1070_p8 = pnand %p1068_p7, %p1065_p6 }
  0x6c   :  { %1073 = shalt.err (!%p1070_p8)
}
  0x6d   :  { %s1074_s16 = scalar_lea.vmem %s96_s24, 128  ;;  %p1079_p10 = scmp.lt.s32.totalorder %s96_s24, %s96_s24 }
  0x6e   :  { %p1075_p9 = scmp.ne.s32.totalorder %s96_s24, %s1074_s16  ;;  %p1080_p11 = scmp.lt.s32.totalorder %s1074_s16, %s1074_s16 }
  0x70   :  { %p1081_p12 = por %p1080_p11, %p1079_p10 }
  0x72   :  { %p1082_p13 = pnand %p1081_p12, %p1075_p9 }
  0x74   :  { %1085 = shalt.err (!%p1082_p13)
}
  0x75   :  { %98 = dma.hbm_to_vmem [thread:$0]  %s1352_s6, 128, %s96_s24, [#allocation12]  }
  0x76   :  { %1108 = dma.done.wait [#allocation3], 256  }
  0x77   :  { %1109 = vsyncadd [#allocation3], 4294967040 }
  0x78   :  { %1110 = dma.done.wait [#allocation6], 1280  }
  0x79   :  { %1111 = vsyncadd [#allocation6], 4294966016 }
  0x7a   :  { %1112 = dma.done.wait [#allocation9], 2048  }
  0x7b   :  { %1113 = vsyncadd [#allocation9], 4294965248 }
  0x7c   :  { %1114 = dma.done.wait [#allocation12], 1152  }
  0x7d   :  { %1115 = vsyncadd [#allocation12], 4294966144  ;;  %v1129_v0 = vmov 0   ;;  %v1130_v1 = vmov 1   ;;  %v1131_v2 = vmov 0.0   ;;  %v128_v3 = vld [vmem:[#allocation2] sm:$0xff]  ;;  %v121_v8 = vlaneseq }
  0x7e   :  { %891 = vset.pattern.permute.xlu0 %v1129_v0  ;;  %892 = vset.pattern.permute.xlu1 %v1130_v1  ;;  %v129_v4 = vld [vmem:[#allocation2 + $0x8] sm:$0xff]  ;;  %v144_v5 = vadd.s32 10, %v128_v3  ;;  %v894_v6 = vld [vmem:[#allocation8] sm:$0xff]   ;;  %v898_v13 = vld [vmem:[#allocation8 + $0x10] sm:$0xff]   ;;  %vm1132_vm0 = vmmov 0   ;;  %s1133_s6 = smov [#allocation14]  }
  0x7f   :  { %795 = vmatprep.subr.bf16.mxu0 %v1131_v2  ;;  %815 = vmatprep.subr.bf16.mxu1 %v1131_v2  ;;  %v895_v7 = vld [vmem:[#allocation7] sm:$0xff]   ;;  %v145_v9 = vadd.s32 10, %v129_v4  ;;  %v896_v10 = vld [vmem:[#allocation8 + $0x8] sm:$0xff]   ;;  %v122_v12 = vshrl.u32 %v121_v8, 7  ;;  %v899_v14 = vld [vmem:[#allocation7 + $0x10] sm:$0xff]   ;;  %v127_v57 = vand.u32 127, %v121_v8 }
  0x80   :  { %131 = vperm.xlu0 %891, %v128_v3   ;;  %147 = vperm.xlu1 %892, %v144_v5   ;;  %v897_v11 = vld [vmem:[#allocation7 + $0x8] sm:$0xff]   ;;  %v900_v16 = vld [vmem:[#allocation8 + $0x18] sm:$0xff]   ;;  %v902_v18 = vld [vmem:[#allocation8 + $0x20] sm:$0xff]   ;;  %s705_s27 = sshll.u32 %s1133_s6, 4  ;;  %s706_s27 = int_to_ptr.vmem [resolvable:$true] %s705_s27 }
  0x81   :  { %796 = vmatpush3.bf16.msra.mxu0 %v894_v6  ;;  %816 = vmatpush3.bf16.msra.mxu1 %v895_v7  ;;  %v1285_v15 = vadd.s32 8, %v122_v12  ;;  %v901_v17 = vld [vmem:[#allocation7 + $0x18] sm:$0xff]   ;;  %v903_v19 = vld [vmem:[#allocation7 + $0x20] sm:$0xff]   ;;  %v177_v20 = vld [vmem:[#allocation5] sm:$0xff]  ;;  %s1086_s0 = scalar_lea.vmem %s706_s27, 256  ;;  %p1091_p1 = scmp.lt.s32.totalorder %s706_s27, %s706_s27 }
  0x82   :  { %797 = vmatprep.subr.bf16.mxu0 %v1131_v2  ;;  %817 = vmatprep.subr.bf16.mxu1 %v1131_v2  ;;  %v178_v21 = vld [vmem:[#allocation5 + $0x8] sm:$0xff]  ;;  %v192_v22 = vmul.f32 %v177_v20, %v177_v20  ;;  %v904_v23 = vld [vmem:[#allocation8 + $0x28] sm:$0xff]   ;;  %v906_v30 = vld [vmem:[#allocation8 + $0x30] sm:$0xff]   ;;  %p1087_p0 = scmp.ne.s32.totalorder %s706_s27, %s1086_s0  ;;  %p1092_p2 = scmp.lt.s32.totalorder %s1086_s0, %s1086_s0 }
  0x83   :  { %811 = vmatprep.mubr.msk.bf16.mxu0 %vm1132_vm0, %v1131_v2  ;;  %831 = vmatprep.mubr.msk.bf16.mxu1 %vm1132_vm0, %v1131_v2  ;;  %vm125_vm1 = vcmp.lt.s32.totalorder %v1285_v15, 12  ;;  %v905_v27 = vld [vmem:[#allocation7 + $0x28] sm:$0xff]   ;;  %v907_v33 = vld [vmem:[#allocation7 + $0x30] sm:$0xff]   ;;  %v908_v36 = vld [vmem:[#allocation8 + $0x38] sm:$0xff]  }
  0x84   :  { %134 = vperm.xlu0 %891, %v129_v4   ;;  %150 = vperm.xlu1 %892, %v145_v9   ;;  %v184_v24 = vsel %vm125_vm1, %v178_v21, 0.0  ;;  %v909_v41 = vld [vmem:[#allocation7 + $0x38] sm:$0xff]   ;;  %v910_v6 = vld [vmem:[#allocation10] sm:$0xff]   ;;  %v911_v7 = vld [vmem:[#allocation10 + $0x8] sm:$0xff]   ;;  %p1093_p3 = por %p1092_p2, %p1091_p1 }
  0x85   :  { %798 = vmatpush3.bf16.msra.mxu0 %v896_v10  ;;  %818 = vmatpush3.bf16.msra.mxu1 %v897_v11  ;;  %v185_v25 = vadd.f32 %v184_v24, %v177_v20  ;;  %v193_v26 = vmul.f32 %v184_v24, %v184_v24  ;;  %v912_v8 = vld [vmem:[#allocation10 + $0x10] sm:$0xff]   ;;  %v913_v9 = vld [vmem:[#allocation10 + $0x18] sm:$0xff]   ;;  %v914_v10 = vld [vmem:[#allocation10 + $0x20] sm:$0xff]  }
  0x86   :  { %799 = vmatprep.subr.bf16.mxu0 %v1131_v2  ;;  %819 = vmatprep.subr.bf16.mxu1 %v1131_v2  ;;  %v915_v11 = vld [vmem:[#allocation10 + $0x28] sm:$0xff]   ;;  %v916_v12 = vld [vmem:[#allocation10 + $0x30] sm:$0xff]   ;;  %p1094_p4 = pnand %p1093_p3, %p1087_p0 }
  0x87   :  { %v186_v28 = vrot.slane %v185_v25, 4  ;;  %v194_v29 = vadd.f32 %v193_v26, %v192_v22 }
  0x88   :  { %893 = vset.pattern.permute.xlu0 %v1130_v1 }
  0x89   :  { %800 = vmatpush3.bf16.msra.mxu0 %v898_v13  ;;  %820 = vmatpush3.bf16.msra.mxu1 %v899_v14  ;;  %v187_v31 = vadd.f32 %v186_v28, %v185_v25  ;;  %v195_v32 = vrot.slane %v194_v29, 4  ;;  %v917_v14 = vld [vmem:[#allocation10 + $0x38] sm:$0xff]  }
  0x8a   :  { %801 = vmatprep.subr.bf16.mxu0 %v1131_v2  ;;  %821 = vmatprep.subr.bf16.mxu1 %v1131_v2 }
  0x8b   :  { %v188_v34 = vrot.slane %v187_v31, 2  ;;  %v196_v35 = vadd.f32 %v195_v32, %v194_v29 }
  0x8d   :  { %802 = vmatpush3.bf16.msra.mxu0 %v900_v16  ;;  %822 = vmatpush3.bf16.msra.mxu1 %v901_v17  ;;  %v189_v37 = vadd.f32 %v188_v34, %v187_v31  ;;  %v197_v38 = vrot.slane %v196_v35, 2 }
  0x8e   :  { %803 = vmatprep.subr.bf16.mxu0 %v1131_v2  ;;  %823 = vmatprep.subr.bf16.mxu1 %v1131_v2 }
  0x8f   :  { %v190_v39 = vrot.slane %v189_v37, 1  ;;  %v198_v40 = vadd.f32 %v197_v38, %v196_v35 }
  0x91   :  { %804 = vmatpush3.bf16.msra.mxu0 %v902_v18  ;;  %824 = vmatpush3.bf16.msra.mxu1 %v903_v19  ;;  %v191_v42 = vadd.f32 %v190_v39, %v189_v37  ;;  %v199_v43 = vrot.slane %v198_v40, 1 }
  0x92   :  { %805 = vmatprep.subr.bf16.mxu0 %v1131_v2  ;;  %825 = vmatprep.subr.bf16.mxu1 %v1131_v2 }
  0x93   :  { %v200_v44 = vadd.f32 %v199_v43, %v198_v40  ;;  %v201_v45 = vmul.f32 0.083333336, %v191_v42 }
  0x95   :  { %806 = vmatpush3.bf16.msra.mxu0 %v904_v23  ;;  %826 = vmatpush3.bf16.msra.mxu1 %v905_v27  ;;  %v202_v46 = vmul.f32 0.083333336, %v200_v44  ;;  %v203_v47 = vmul.f32 %v201_v45, %v201_v45  ;;  %v206_v51 = vsub.f32 %v177_v20, %v201_v45  ;;  %v207_v52 = vsub.f32 %v178_v21, %v201_v45  ;;  %v740_v20 = vld [vmem:[#allocation13] ss:$0 sm:$0xff] }
  0x96   :  { %807 = vmatprep.subr.bf16.mxu0 %v1131_v2  ;;  %827 = vmatprep.subr.bf16.mxu1 %v1131_v2 }
  0x97   :  { %v204_v48 = vsub.f32 %v202_v46, %v203_v47 }
  0x99   :  { %808 = vmatpush3.bf16.msra.mxu0 %v906_v30  ;;  %828 = vmatpush3.bf16.msra.mxu1 %v907_v33  ;;  %v205_v49 = vmax.f32 %v204_v48, 0.0 }
  0x9a   :  { %809 = vmatprep.subr.bf16.mxu0 %v1131_v2  ;;  %829 = vmatprep.subr.bf16.mxu1 %v1131_v2 }
  0x9b   :  { %v208_v50 = vadd.f32 1e-05, %v205_v49 }
  0x9d   :  { %810 = vmatpush3.bf16.msra.mxu0 %v908_v36  ;;  %830 = vmatpush3.bf16.msra.mxu1 %v909_v41  ;;  %926 = vrsqrt.f32 %v208_v50 }
  0x9e   :  { %835 = vmatprep.subr.bf16.mxu0 %v1131_v2  ;;  %855 = vmatprep.subr.bf16.mxu1 %v1131_v2 }
  0xa7   :  { %v927_v53 = vpop.eup %926 }
  0xa8   :  { %v210_v54 = vmul.f32 %v927_v53, %v206_v51  ;;  %v211_v55 = vmul.f32 %v927_v53, %v207_v52 }
  0xaa   :  { %v212_v56 = vpack.c.bf16 %v211_v55, %v210_v54 }
  0xac   :  { %812 = vmatmul.mubr.bf16.vlgmr.msra.gmra.mrb[0].mxu0 %v212_v56 }
  0xad   :  { %851 = vmatprep.mubr.msk.bf16.mxu0 %vm1132_vm0, %v1131_v2  ;;  %836 = vmatpush3.bf16.msra.mxu0 %v910_v6 }
  0xae   :  { %837 = vmatprep.subr.bf16.mxu0 %v1131_v2 }
  0xb1   :  { %838 = vmatpush3.bf16.msra.mxu0 %v911_v7 }
  0xb2   :  { %839 = vmatprep.subr.bf16.mxu0 %v1131_v2 }
  0xb5   :  { %840 = vmatpush3.bf16.msra.mxu0 %v912_v8 }
  0xb6   :  { %841 = vmatprep.subr.bf16.mxu0 %v1131_v2 }
  0xb9   :  { %842 = vmatpush3.bf16.msra.mxu0 %v913_v9 }
  0xba   :  { %843 = vmatprep.subr.bf16.mxu0 %v1131_v2 }
  0xbd   :  { %844 = vmatpush3.bf16.msra.mxu0 %v914_v10 }
  0xbe   :  { %845 = vmatprep.subr.bf16.mxu0 %v1131_v2 }
  0xc1   :  { %846 = vmatpush3.bf16.msra.mxu0 %v915_v11 }
  0xc2   :  { %847 = vmatprep.subr.bf16.mxu0 %v1131_v2 }
  0xc5   :  { %848 = vmatpush3.bf16.msra.mxu0 %v916_v12 }
  0xc6   :  { %849 = vmatprep.subr.bf16.mxu0 %v1131_v2 }
  0xc9   :  { %850 = vmatpush3.bf16.msra.mxu0 %v917_v14 }
  0xff   :  { %v132_v58 = vpop.permute.xlu0 %131  ;;  %v148_v59 = vpop.permute.xlu1 %147 }
 0x100   :  { %vm136_vm2 = vcmp.eq.s32.totalorder %v127_v57, %v132_v58  ;;  %vm152_vm3 = vcmp.eq.s32.totalorder %v127_v57, %v148_v59  ;;  %v918_v59 = vld [vmem:[#allocation11] sm:$0xff]  }
 0x101   :  { %v720_v61 = vsel %vm136_vm2, 1.0, %v1131_v2  ;;  %v722_v62 = vsel %vm152_vm3, 1.0, %v1131_v2 }
 0x102   :  { %v158_v3 = vadd.f32 %v722_v62, %v720_v61  ;;  %v920_v61 = vld [vmem:[#allocation11 + $0x10] sm:$0xff]   ;;  %v921_v62 = vld [vmem:[#allocation11 + $0x18] sm:$0xff]  }
 0x103   :  { %v135_v60 = vpop.permute.xlu0 %134  ;;  %v151_v63 = vpop.permute.xlu1 %150 }
 0x104   :  { %vm137_vm4 = vcmp.eq.s32.totalorder %v127_v57, %v135_v60  ;;  %vm153_vm5 = vcmp.eq.s32.totalorder %v127_v57, %v151_v63  ;;  %v919_v60 = vld [vmem:[#allocation11 + $0x8] sm:$0xff]   ;;  %v922_v63 = vld [vmem:[#allocation11 + $0x20] sm:$0xff]  }
 0x105   :  { %v721_v0 = vsel %vm137_vm4, 1.0, %v1131_v2  ;;  %v723_v1 = vsel %vm153_vm5, 1.0, %v1131_v2 }
 0x106   :  { %v159_v4 = vadd.f32 %v723_v1, %v721_v0  ;;  %v923_v0 = vld [vmem:[#allocation11 + $0x28] sm:$0xff]   ;;  %v924_v1 = vld [vmem:[#allocation11 + $0x30] sm:$0xff]  }
 0x108   :  { %v160_v5 = vpack.c.bf16 %v159_v4, %v158_v3  ;;  %v925_v3 = vld [vmem:[#allocation11 + $0x38] sm:$0xff]   ;;  %v741_v4 = vld [vmem:[#allocation13 + $0x1] ss:$0 sm:$0xff] }
 0x10a   :  { %832 = vmatmul.mubr.bf16.vlgmr.msra.gmra.mrb[0].mxu1 %v160_v5 }
 0x10b   :  { %871 = vmatprep.mubr.msk.bf16.mxu1 %vm1132_vm0, %v1131_v2  ;;  %856 = vmatpush3.bf16.msra.mxu1 %v918_v59 }
 0x10c   :  { %857 = vmatprep.subr.bf16.mxu1 %v1131_v2 }
 0x10f   :  { %858 = vmatpush3.bf16.msra.mxu1 %v919_v60 }
 0x110   :  { %859 = vmatprep.subr.bf16.mxu1 %v1131_v2 }
 0x113   :  { %860 = vmatpush3.bf16.msra.mxu1 %v920_v61 }
 0x114   :  { %861 = vmatprep.subr.bf16.mxu1 %v1131_v2 }
 0x117   :  { %862 = vmatpush3.bf16.msra.mxu1 %v921_v62 }
 0x118   :  { %863 = vmatprep.subr.bf16.mxu1 %v1131_v2 }
 0x11b   :  { %864 = vmatpush3.bf16.msra.mxu1 %v922_v63 }
 0x11c   :  { %865 = vmatprep.subr.bf16.mxu1 %v1131_v2 }
 0x11f   :  { %866 = vmatpush3.bf16.msra.mxu1 %v923_v0 }
 0x120   :  { %867 = vmatprep.subr.bf16.mxu1 %v1131_v2 }
 0x123   :  { %868 = vmatpush3.bf16.msra.mxu1 %v924_v1 }
 0x124   :  { %869 = vmatprep.subr.bf16.mxu1 %v1131_v2 }
 0x127   :  { %870 = vmatpush3.bf16.msra.mxu1 %v925_v3 }
 0x17f   :  { %v311_v13 = vpop.f32.mrb[0].mxu0 }
 0x180   :  { %v813_v16 = vpop.f32.mrb[1].mxu0 }
 0x181   :  { %v314_v17 = vpop.f32.mrb[2].mxu0 }
 0x182   :  { %v814_v18 = vpop.f32.mrb[3].mxu0 }
 0x1dd   :  { %v400_v19 = vpop.f32.mrb[0].mxu1 }
 0x1de   :  { %v401_v21 = vadd.f32 %v400_v19, %v311_v13  ;;  %v833_v22 = vpop.f32.mrb[1].mxu1 }
 0x1df   :  { %v403_v23 = vpop.f32.mrb[2].mxu1 }
 0x1e0   :  { %v412_v24 = vadd.f32 %v740_v20, %v401_v21  ;;  %v404_v25 = vadd.f32 %v403_v23, %v314_v17  ;;  %v834_v26 = vpop.f32.mrb[3].mxu1 }
 0x1e2   :  { %v413_v27 = vadd.f32 %v740_v20, %v404_v25  ;;  %v414_v28 = vmax.f32 %v412_v24, 0.0 }
 0x1e4   :  { %v415_v29 = vmax.f32 %v413_v27, 0.0  ;;  %v425_v31 = vmul.f32 %v414_v28, %v414_v28 }
 0x1e6   :  { %v417_v30 = vsel %vm125_vm1, %v415_v29, 0.0 }
 0x1e7   :  { %v418_v32 = vadd.f32 %v417_v30, %v414_v28  ;;  %v426_v33 = vmul.f32 %v417_v30, %v417_v30 }
 0x1e9   :  { %v419_v34 = vrot.slane %v418_v32, 4  ;;  %v427_v35 = vadd.f32 %v426_v33, %v425_v31 }
 0x1eb   :  { %v420_v36 = vadd.f32 %v419_v34, %v418_v32  ;;  %v428_v37 = vrot.slane %v427_v35, 4 }
 0x1ed   :  { %v421_v38 = vrot.slane %v420_v36, 2  ;;  %v429_v39 = vadd.f32 %v428_v37, %v427_v35 }
 0x1ef   :  { %v422_v40 = vadd.f32 %v421_v38, %v420_v36  ;;  %v430_v41 = vrot.slane %v429_v39, 2 }
 0x1f1   :  { %v423_v42 = vrot.slane %v422_v40, 1  ;;  %v431_v43 = vadd.f32 %v430_v41, %v429_v39  ;;  %v750_v41 = vld [vmem:[#allocation13 + $0x2] ss:$0 sm:$0xff] }
 0x1f3   :  { %v424_v44 = vadd.f32 %v423_v42, %v422_v40  ;;  %v432_v45 = vrot.slane %v431_v43, 1 }
 0x1f5   :  { %v433_v46 = vadd.f32 %v432_v45, %v431_v43  ;;  %v434_v47 = vmul.f32 0.083333336, %v424_v44 }
 0x1f7   :  { %v435_v48 = vmul.f32 0.083333336, %v433_v46  ;;  %v436_v49 = vmul.f32 %v434_v47, %v434_v47  ;;  %v440_v50 = vsub.f32 %v415_v29, %v434_v47  ;;  %v439_v51 = vsub.f32 %v414_v28, %v434_v47 }
 0x1f9   :  { %v437_v52 = vsub.f32 %v435_v48, %v436_v49 }
 0x1fb   :  { %v438_v53 = vmax.f32 %v437_v52, 0.0 }
 0x1fd   :  { %v441_v54 = vadd.f32 1e-05, %v438_v53 }
 0x1ff   :  { %928 = vrsqrt.f32 %v441_v54 }
 0x209   :  { %v929_v55 = vpop.eup %928 }
 0x20a   :  { %v444_v56 = vmul.f32 %v929_v55, %v440_v50  ;;  %v443_v57 = vmul.f32 %v929_v55, %v439_v51 }
 0x20c   :  { %v445_v58 = vpack.c.bf16 %v444_v56, %v443_v57 }
 0x20e   :  { %852 = vmatmul.mubr.bf16.vlgmr.msra.gmra.mrb[4].mxu0 %v445_v58 }
 0x2e1   :  { %v549_v5 = vpop.f32.mrb[4].mxu0 }
 0x2e2   :  { %v550_v6 = vadd.f32 %v741_v4, %v549_v5  ;;  %v853_v7 = vpop.f32.mrb[5].mxu0 }
 0x2e3   :  { %v552_v8 = vpop.f32.mrb[6].mxu0 }
 0x2e4   :  { %v553_v9 = vadd.f32 %v741_v4, %v552_v8  ;;  %v854_v10 = vpop.f32.mrb[7].mxu0  ;;  %v556_v11 = vmax.f32 %v550_v6, 0.0 }
 0x2e6   :  { %v557_v12 = vmax.f32 %v553_v9, 0.0  ;;  %v567_v14 = vmul.f32 %v556_v11, %v556_v11 }
 0x2e8   :  { %v559_v13 = vsel %vm125_vm1, %v557_v12, 0.0 }
 0x2e9   :  { %v560_v16 = vadd.f32 %v559_v13, %v556_v11  ;;  %v568_v17 = vmul.f32 %v559_v13, %v559_v13 }
 0x2eb   :  { %v561_v18 = vrot.slane %v560_v16, 4  ;;  %v569_v19 = vadd.f32 %v568_v17, %v567_v14 }
 0x2ed   :  { %v562_v2 = vadd.f32 %v561_v18, %v560_v16  ;;  %v570_v20 = vrot.slane %v569_v19, 4 }
 0x2ef   :  { %v563_v21 = vrot.slane %v562_v2, 2  ;;  %v571_v22 = vadd.f32 %v570_v20, %v569_v19 }
 0x2f1   :  { %v564_v23 = vadd.f32 %v563_v21, %v562_v2  ;;  %v572_v24 = vrot.slane %v571_v22, 2 }
 0x2f3   :  { %v565_v25 = vrot.slane %v564_v23, 1  ;;  %v573_v26 = vadd.f32 %v572_v24, %v571_v22 }
 0x2f5   :  { %v566_v27 = vadd.f32 %v565_v25, %v564_v23  ;;  %v574_v28 = vrot.slane %v573_v26, 1 }
 0x2f7   :  { %v575_v29 = vadd.f32 %v574_v28, %v573_v26  ;;  %v576_v30 = vmul.f32 0.083333336, %v566_v27 }
 0x2f9   :  { %v577_v31 = vmul.f32 0.083333336, %v575_v29  ;;  %v578_v15 = vmul.f32 %v576_v30, %v576_v30  ;;  %v581_v32 = vsub.f32 %v556_v11, %v576_v30  ;;  %v582_v33 = vsub.f32 %v557_v12, %v576_v30 }
 0x2fb   :  { %v579_v34 = vsub.f32 %v577_v31, %v578_v15 }
 0x2fd   :  { %v580_v35 = vmax.f32 %v579_v34, 0.0 }
 0x2ff   :  { %v583_v36 = vadd.f32 1e-05, %v580_v35 }
 0x301   :  { %930 = vrsqrt.f32 %v583_v36 }
 0x30b   :  { %v931_v37 = vpop.eup %930 }
 0x30c   :  { %v585_v38 = vmul.f32 %v931_v37, %v581_v32  ;;  %v586_v39 = vmul.f32 %v931_v37, %v582_v33 }
 0x30e   :  { %v587_v40 = vpack.c.bf16 %v586_v39, %v585_v38 }
 0x310   :  { %872 = vmatmul.mubr.bf16.vlgmr.msra.gmra.mrb[4].mxu1 %v587_v40 }
 0x3e3   :  { %v691_v42 = vpop.f32.mrb[4].mxu1 }
 0x3e4   :  { %v692_v43 = vadd.f32 %v750_v41, %v691_v42  ;;  %v873_v44 = vpop.f32.mrb[5].mxu1 }
 0x3e5   :  { %v694_v45 = vpop.f32.mrb[6].mxu1 }
 0x3e6   :  { %698 = vst [vmem:[#allocation14] sm:$0xff] %v692_v43  ;;  %v695_v46 = vadd.f32 %v750_v41, %v694_v45  ;;  %v874_v47 = vpop.f32.mrb[7].mxu1 }
 0x3e8   :  { %699 = vst [vmem:[#allocation14 + $0x8] sm:$0xff] %v695_v46 }
 0x3e9   :  { %1097 = shalt.err (!%p1094_p4)
}
 0x3ea   :  { %s1098_s21 = scalar_lea.hbm %s1353_s7, 256 }
 0x3eb   :  { %p1099_p5 = scmp.ne.s32.totalorder %s1353_s7, %s1098_s21  ;;  %p1102_p6 = scmp.lt.u32.totalorder %s1098_s21, %s1353_s7 }
 0x3ed   :  { %p1104_p7 = pnand %p1102_p6, %p1099_p5 }
 0x3ef   :  { %1107 = shalt.err (!%p1104_p7)
}
 0x3f0   :  { %711 = dma.vmem_to_hbm [thread:$0]  %s706_s27, 256, %s1353_s7, [#allocation4], %s1119_s11, %s1119_s11, %s1120_s12  }
 0x3f1   :  { %1116 = dma.done.wait [#allocation4], 256  }
 0x3f2   :  { %1117 = vsyncadd [#allocation4], 4294967040 }
 0x3f3   :  { %715 = vsyncpa [#allocation3], 1 }
 0x3f4   :  { %716 = vsyncpa [#allocation6], 1 }
 0x3f5   :  { %717 = vsyncpa [#allocation9], 1 }
 0x3f6   :  { %718 = vsyncpa [#allocation12], 1 }
 0x3f7   :  { %719 = vsyncpa [#allocation4], 1 }

</bundles_post_ra>
